<compile_context>
chip_gen: v6e
topology: v6e:2x2x1
jax: 0.10.0
libtpu: 0.0.40
codegen_flags: <defaults>
</compile_context>

<pallas_src>
import jax
import jax.numpy as jnp
from jax import lax
from jax.experimental import pallas as pl
from jax.experimental.pallas import tpu as pltpu


def _round_up(x: int, m: int) -> int:
    return ((x + m - 1) // m) * m


def _choose_batches_per_step(B: int, hw_pad: int, lane_cap: int = 32768) -> int:
    """How many whole batches to fold into one lane tile."""
    bt = max(1, min(B, lane_cap // max(hw_pad, 1)))
    if B >= 2:
        # keep >= 2 grid steps so both v7x TensorCores get work
        bt = min(bt, (B + 1) // 2)
    return bt


# ------------------------------- wrapper ------------------------------------ #
def task_net_forward(x_nchw, conv_w, conv_b, proj_w, proj_b,
                     *, compute_dtype=jnp.bfloat16):
    """x_nchw: (B, Cin, H, W) f32. conv_w: (Cmid, Cin, 3, 3) (PyTorch OIHW).
    proj_w: (num_classes, Cmid) (PyTorch Linear). Returns (B, num_classes) f32."""
    B, Cin, H, W = x_nchw.shape
    Cmid, _, KH, KW = conv_w.shape
    C = proj_w.shape[0]
    K = Cin * KH * KW
    HW = H * W

    hw_pad = _round_up(HW, 128)          # per-batch lane segment (128-aligned)
    C_pad = _round_up(C, 128)            # lane-dense logits slab

    bt = _choose_batches_per_step(B, hw_pad)
    num_steps = -(-B // bt)
    B_pad = num_steps * bt
    tile_lanes = bt * hw_pad

    # --- glue: cast early, pad once, ONE 1x transpose, direct (K, lanes) build ---
    x_bf = x_nchw.astype(compute_dtype)                               # cast before im2col
    x_padded = jnp.pad(x_bf, ((0, 0), (0, 0), (1, 1), (1, 1)))        # (B,Cin,H+2,W+2)
    x_cm = jnp.transpose(x_padded, (1, 0, 2, 3))                      # (Cin,B,H+2,W+2), 1x-sized
    taps = [x_cm[:, :, kh:kh + H, kw:kw + W]                          # 9 shifted views
            for kh in range(KH) for kw in range(KW)]
    patches = jnp.stack(taps, axis=1)                                 # (Cin, 9, B, H, W)
    patches = patches.reshape(K, B, HW)                               # K = cin*9 + kh*KW + kw
    patches = jnp.pad(patches, ((0, 0), (0, B_pad - B), (0, hw_pad - HW)))
    patches_t = patches.reshape(K, B_pad * hw_pad)                    # lane-dense slab

    # conv weight (OIHW) flattened directly -> (Cmid, Cin*KH*KW), matches K order above.
    conv_w_mat = conv_w.reshape(Cmid, K).astype(compute_dtype)
    conv_b_col = conv_b.reshape(Cmid, 1).astype(jnp.float32)

    # projection (PyTorch Linear: x @ W.T + b); padded to lane-dense C_pad, kept f32.
    proj_w_mat = jnp.zeros((Cmid, C_pad), jnp.float32).at[:, :C].set(
        jnp.transpose(proj_w, (1, 0)).astype(jnp.float32))
    proj_b_row = jnp.zeros((1, C_pad), jnp.float32).at[:, :C].set(
        proj_b.astype(jnp.float32))

    inv_hw = 1.0 / float(HW)
    n_pad_lanes = float(hw_pad - HW)

    # ----------------------------- Pallas kernel --------------------------- #
    def kernel(patches_ref, conv_w_ref, conv_b_ref, proj_w_ref, proj_b_ref,
               out_ref):
        # conv-as-matmul, lane-dense: (Cmid, K) @ (K, bt*hw_pad), f32 MXU acc.
        h = jnp.dot(conv_w_ref[...], patches_ref[...],
                    preferred_element_type=jnp.float32)
        h = jnp.maximum(h + conv_b_ref[...], 0.0)           # bias + ReLU (f32 VPU)

        # zero-padded spatial lanes each contributed relu(conv_b); correct analytically.
        if hw_pad != HW:
            pad_corr = n_pad_lanes * jnp.maximum(conv_b_ref[...], 0.0)   # (Cmid, 1)
        else:
            pad_corr = None
        pw = proj_w_ref[...]                                  # (Cmid, C_pad)
        pb = proj_b_ref[...]                                  # (1, C_pad)

        rows = []
        for j in range(bt):                                   # static, 128-aligned slices
            seg = h[:, j * hw_pad:(j + 1) * hw_pad]
            seg_sum = jnp.sum(seg, axis=-1, keepdims=True)    # (Cmid, 1) lane reduce
            if pad_corr is not None:
                seg_sum = seg_sum - pad_corr
            feat_j = seg_sum * inv_hw                         # global average pool
            # projection: y[c] = sum_m proj_w[m, c] * feat[m]  (tiny, VPU path)
            rows.append(jnp.sum(pw * feat_j, axis=0, keepdims=True) + pb)  # (1, C_pad)

        y = rows[0] if bt == 1 else jnp.concatenate(rows, axis=0)          # (bt, C_pad)
        out_ref[...] = y.reshape(out_ref.shape).astype(out_ref.dtype)

    itemsize = jnp.dtype(compute_dtype).itemsize
    cost = pl.CostEstimate(
        flops=2 * K * Cmid * B_pad * hw_pad + 2 * Cmid * C_pad * B_pad,
        transcendentals=0,
        bytes_accessed=int(K * B_pad * hw_pad * itemsize + Cmid * K * itemsize
                           + (Cmid + Cmid * C_pad + C_pad) * 4
                           + B_pad * C_pad * 4),
    )

    out = pl.pallas_call(
        kernel,
        out_shape=jax.ShapeDtypeStruct((num_steps, bt, C_pad), jnp.float32),
        grid_spec=pltpu.PrefetchScalarGridSpec(
            num_scalar_prefetch=0,
            grid=(num_steps,),
            in_specs=[
                pl.BlockSpec((K, tile_lanes), lambda g: (0, g)),
                pl.BlockSpec((Cmid, K), lambda g: (0, 0)),
                pl.BlockSpec((Cmid, 1), lambda g: (0, 0)),
                pl.BlockSpec((Cmid, C_pad), lambda g: (0, 0)),
                pl.BlockSpec((1, C_pad), lambda g: (0, 0)),
            ],
            out_specs=pl.BlockSpec((1, bt, C_pad), lambda g: (g, 0, 0)),
        ),
        compiler_params=pltpu.CompilerParams(
            dimension_semantics=("parallel",),
            vmem_limit_bytes=32 * 1024 * 1024,
        ),
        cost_estimate=cost,
    )(patches_t, conv_w_mat, conv_b_col, proj_w_mat, proj_b_row)

    return out.reshape(B_pad, C_pad)[:B, :C]


# --------------------------- plain-JAX reference ---------------------------- #
def task_net_reference(x_nchw, conv_w, conv_b, proj_w, proj_b):
    conv = lax.conv_general_dilated(
        x_nchw.astype(jnp.float32), conv_w.astype(jnp.float32),
        window_strides=(1, 1), padding="SAME",
        dimension_numbers=("NCHW", "OIHW", "NCHW"))
    conv = conv + conv_b.reshape(1, -1, 1, 1)
    act = jnp.maximum(conv, 0.0)
    feat = jnp.mean(act, axis=(2, 3))                                # (B, Cmid)
    return feat @ proj_w.T + proj_b


if __name__ == "__main__":
    B, Cin, H, W = 2, 4, 16, 16
    Cmid, num_classes = 8, 10

    key = jax.random.PRNGKey(0)
    kx, kcw, kcb, kpw, kpb = jax.random.split(key, 5)
    x = jax.random.normal(kx, (B, Cin, H, W), dtype=jnp.float32)
    conv_w = 0.1 * jax.random.normal(kcw, (Cmid, Cin, 3, 3), dtype=jnp.float32)
    conv_b = 0.1 * jax.random.normal(kcb, (Cmid,), dtype=jnp.float32)
    proj_w = 0.1 * jax.random.normal(kpw, (num_classes, Cmid), dtype=jnp.float32)
    proj_b = 0.1 * jax.random.normal(kpb, (num_classes,), dtype=jnp.float32)

    y = task_net_forward(x, conv_w, conv_b, proj_w, proj_b)
    y = jax.block_until_ready(y)

    y_ref = task_net_reference(x, conv_w, conv_b, proj_w, proj_b)
    assert y.shape == (B, num_classes)
    # bf16 input stream with f32 accumulation -> slightly relaxed tolerance.
    assert jnp.allclose(y, y_ref, rtol=2e-2, atol=2e-3), "mismatch vs reference"

    print("KERNEL_OK")
</pallas_src>

<mosaic_0001>
module attributes {stable_mosaic.version = 11 : i64} {
  func.func @kernel(%arg0: i32, %arg1: memref<36x256xbf16, #tpu.memory_space<vmem>>, %arg2: memref<8x36xbf16, #tpu.memory_space<vmem>>, %arg3: memref<8x1xf32, #tpu.memory_space<vmem>>, %arg4: memref<8x128xf32, #tpu.memory_space<vmem>>, %arg5: memref<1x128xf32, #tpu.memory_space<vmem>>, %arg6: memref<1x1x128xf32, #tpu.memory_space<vmem>>) attributes {dimension_semantics = [#tpu.dimension_semantics<parallel>], iteration_bounds = array<i64: 2>, scalar_prefetch = 0 : i64, scratch_operands = 0 : i64, tpu.core_type = #tpu.core_type<tc>, window_params = [{transform_indices = @transform_0, window_bounds = array<i64: 36, 256>}, {pipeline_mode = #tpu.pipeline_mode<synchronous>, transform_indices = @transform_1, window_bounds = array<i64: 8, 36>}, {pipeline_mode = #tpu.pipeline_mode<synchronous>, transform_indices = @transform_2, window_bounds = array<i64: 8, 1>}, {pipeline_mode = #tpu.pipeline_mode<synchronous>, transform_indices = @transform_3, window_bounds = array<i64: 8, 128>}, {pipeline_mode = #tpu.pipeline_mode<synchronous>, transform_indices = @transform_4, window_bounds = array<i64: 1, 128>}, {transform_indices = @transform_5, window_bounds = array<i64: 1, 1, 128>}]} {
    %c0 = arith.constant 0 : index
    %c0_0 = arith.constant 0 : index
    %0 = vector.load %arg2[%c0, %c0_0] : memref<8x36xbf16, #tpu.memory_space<vmem>>, vector<8x36xbf16>
    %c0_1 = arith.constant 0 : index
    %c0_2 = arith.constant 0 : index
    %1 = vector.load %arg1[%c0_1, %c0_2] : memref<36x256xbf16, #tpu.memory_space<vmem>>, vector<36x256xbf16>
    %cst = arith.constant dense<0.000000e+00> : vector<8x256xf32>
    %2 = tpu.matmul %0, %1, %cst {dimension_numbers = #tpu.dot_dimension_numbers<[1], [0], [0], [1], [0, 0, 1, 1], [], []>} : vector<8x36xbf16>, vector<36x256xbf16>, vector<8x256xf32> -> vector<8x256xf32>
    %c0_3 = arith.constant 0 : index
    %c0_4 = arith.constant 0 : index
    %3 = vector.load %arg3[%c0_3, %c0_4] : memref<8x1xf32, #tpu.memory_space<vmem>>, vector<8x1xf32>
    %4 = vector.broadcast %3 : vector<8x1xf32> to vector<8x256xf32>
    %5 = arith.addf %2, %4 : vector<8x256xf32>
    %cst_5 = arith.constant 0.000000e+00 : f32
    %6 = vector.broadcast %cst_5 : f32 to vector<8x256xf32>
    %7 = arith.maximumf %5, %6 : vector<8x256xf32>
    %c0_6 = arith.constant 0 : index
    %c0_7 = arith.constant 0 : index
    %8 = vector.load %arg4[%c0_6, %c0_7] : memref<8x128xf32, #tpu.memory_space<vmem>>, vector<8x128xf32>
    %c0_8 = arith.constant 0 : index
    %c0_9 = arith.constant 0 : index
    %9 = vector.load %arg5[%c0_8, %c0_9] : memref<1x128xf32, #tpu.memory_space<vmem>>, vector<1x128xf32>
    %cst_10 = arith.constant dense<0.000000e+00> : vector<8xf32>
    %10 = vector.multi_reduction <add>, %7, %cst_10 [1] : vector<8x256xf32> to vector<8xf32>
    %11 = vector.shape_cast %10 : vector<8xf32> to vector<8x1xf32>
    %cst_11 = arith.constant 3.906250e-03 : f32
    %12 = vector.broadcast %cst_11 : f32 to vector<8x1xf32>
    %13 = arith.mulf %11, %12 : vector<8x1xf32>
    %14 = vector.broadcast %13 : vector<8x1xf32> to vector<8x128xf32>
    %15 = arith.mulf %8, %14 : vector<8x128xf32>
    %cst_12 = arith.constant dense<0.000000e+00> : vector<128xf32>
    %16 = vector.multi_reduction <add>, %15, %cst_12 [0] : vector<8x128xf32> to vector<128xf32>
    %17 = vector.shape_cast %16 : vector<128xf32> to vector<1x128xf32>
    %18 = arith.addf %17, %9 : vector<1x128xf32>
    %19 = vector.shape_cast %18 : vector<1x128xf32> to vector<1x1x128xf32>
    %c0_13 = arith.constant 0 : index
    %c0_14 = arith.constant 0 : index
    %c0_15 = arith.constant 0 : index
    %20 = vector.load %arg6[%c0_13, %c0_14, %c0_15] : memref<1x1x128xf32, #tpu.memory_space<vmem>>, vector<1x1x128xf32>
    tpu.vector_store %arg6[%c0_13, %c0_14, %c0_15], %19 {strides = array<i32>} : memref<1x1x128xf32, #tpu.memory_space<vmem>>, vector<1x1x128xf32>,
    return
  }
  func.func @transform_0(%arg0: i32) -> (i32, i32) {
    %c0_i32 = arith.constant 0 : i32
    %c0_i32_0 = arith.constant 0 : i32
    return %c0_i32, %arg0 : i32, i32
  }
  func.func @transform_1(%arg0: i32) -> (i32, i32) {
    %c0_i32 = arith.constant 0 : i32
    %c0_i32_0 = arith.constant 0 : i32
    %c0_i32_1 = arith.constant 0 : i32
    return %c0_i32, %c0_i32_0 : i32, i32
  }
  func.func @transform_2(%arg0: i32) -> (i32, i32) {
    %c0_i32 = arith.constant 0 : i32
    %c0_i32_0 = arith.constant 0 : i32
    %c0_i32_1 = arith.constant 0 : i32
    return %c0_i32, %c0_i32_0 : i32, i32
  }
  func.func @transform_3(%arg0: i32) -> (i32, i32) {
    %c0_i32 = arith.constant 0 : i32
    %c0_i32_0 = arith.constant 0 : i32
    %c0_i32_1 = arith.constant 0 : i32
    return %c0_i32, %c0_i32_0 : i32, i32
  }
  func.func @transform_4(%arg0: i32) -> (i32, i32) {
    %c0_i32 = arith.constant 0 : i32
    %c0_i32_0 = arith.constant 0 : i32
    %c0_i32_1 = arith.constant 0 : i32
    return %c0_i32, %c0_i32_0 : i32, i32
  }
  func.func @transform_5(%arg0: i32) -> (i32, i32, i32) {
    %c0_i32 = arith.constant 0 : i32
    %c0_i32_0 = arith.constant 0 : i32
    %c0_i32_1 = arith.constant 0 : i32
    return %arg0, %c0_i32, %c0_i32_0 : i32, i32, i32
  }
}

</mosaic_0001>

<bundles_post_ra>
// kernel: tpu_custom_call.1
= control target key start
LH: loop header
LB: loop body
LE: loop exit
PB: predicated region body
PF: predicated region fallthrough
CT: control target
= control target key end

     0   :  { %10 = vsyncpa [#allocation3], 0  ;;  %s787_s0 = inlined_call_operand.hbm [shape: bf16[36,512], index: 0, kind: input, shape index: {}]   ;;  %s788_s1 = inlined_call_operand.vmem [shape: bf16[8,36], index: 1, kind: input, shape index: {}]   ;;  %s789_s2 = inlined_call_operand.vmem [shape: f32[8,1], index: 2, kind: input, shape index: {}]   ;;  %s790_s3 = inlined_call_operand.vmem [shape: f32[8,128], index: 3, kind: input, shape index: {}]   ;;  %s791_s4 = inlined_call_operand.vmem [shape: f32[1,128], index: 4, kind: input, shape index: {}]   ;;  %s792_s5 = inlined_call_operand.hbm [shape: f32[2,1,128], index: 5, kind: output, shape index: {}]  }
   0x1   :  { %12 = vsyncpa [#allocation3 + $0x1], 0 }
   0x2   :  { %13 = vsyncpa [#allocation4], 0 }
   0x3   :  { %15 = vsyncpa [#allocation4 + $0x1], 0  ;;  %s638_s18 = smov 0   ;;  %s640_s19 = smov 0  }
   0x4   :  { %s642_s20 = smov 0   ;;  %s644_s21 = smov 0  }
   0x5 LB: > { %s659_s22 = sadd.s32 4294967295, %s600_s21   ;;  %s429_s23 = sadd.s32 4294967294, %s600_s21   ;;  %s600_s21 = sphi %s644_s21, %s807_s21   ;;  %s596_s20 = sphi %s642_s20, %s806_s20   ;;  %s592_s19 = sphi %s640_s19, %s805_s19   ;;  %s588_s18 = sphi %s638_s18, %s804_s18  }
   0x6   : > { %s663_s24 = sadd.s32 1, %s600_s21   ;;  %s28_s25 = sadd.s32 1, %s596_s20 }
   0x7   : > { %s25_s26 = ssub.s32 %s600_s21, %s663_s24  ;;  %p35_p0 = scmp.ne.s32.totalorder %s596_s20, %s592_s19 }
   0x8   : > { %p26_p1 = scmp.eq.s32.totalorder %s25_s26, 0  ;;  %p36_p2 = scmp.eq.s32.totalorder %s600_s21, 0 }
   0x9   : > { %p41_p3 = scmp.ne.s32.totalorder %s592_s19, %s588_s18  ;;  %p42_p4 = scmp.eq.s32.totalorder %s659_s22, 0 }
   0xa   : > { %s675_s27 = scalar_select %p26_p1, %s596_s20, %s28_s25  }
   0xb   : > { %p37_p5 = por %p36_p2, %p35_p0  ;;  %p677_p6 = por %p42_p4, %p41_p3 }
   0xc   : > { %p149_p7 = scmp.eq.s32.totalorder %s659_s22, 1  ;;  %p155_p8 = scmp.eq.s32.totalorder %s429_s23, 1 }
   0xd   : > { %s795_s28 = scalar_select %p677_p6, 1, 0 }
   0xe   : > { %p461_p10 = scmp.lt.s32.totalorder %s600_s21, 2  ;;  %p684_p11 = por %p149_p7, %p35_p0 }
   0xf   : > { %p688_p12 = por %p155_p8, %p41_p3  ;;  %s187_s6 = sand.u32 1, %s596_s20  }
  0x10   : > { %s796_s29 = scalar_select %p684_p11, 1, 0 }
  0x11   : > { %s797_s30 = scalar_select %p688_p12, 1, 0 }
  0x12   : > { %s446_s7 = sshll.u32 %s600_s21, 7  ;;  %s447_s8 = smul.u32 40, %s187_s6 }
  0x13   : > { %s697_s11 = scalar_lea.hbm %s787_s0, %s446_s7  ;;  %p699_p13 = pnand %p461_p10, %p37_p5 }
  0x14   : > { %s191_s13 = scalar_lea.vmem [#allocation2], %s447_s8  ;;  %s706_s15 = scalar_lea.sflag [#allocation3], %s187_s6 }
  0x15   : > { %s198_s14 = sshll.u32 %s191_s13, 4  ;;  %s508_s16 = scalar_lea.hbm %s697_s11, 640  ;;  %s703_s14 = int_to_ptr.vmem [resolvable:$true] %s198_s14 }
  0x16   : > { %p509_p1 = scmp.ne.s32.totalorder %s697_s11, %s508_s16  ;;  %p510_p2 = pneg %p699_p13 }
  0x17   : > { %s513_s25 = scalar_lea.hbm %s787_s0, 1280  ;;  %p514_p5 = scmp.lt.s32.totalorder %s697_s11, %s787_s0 }
  0x18   : > { %p511_p3 = pnand %p510_p2, %p509_p1  ;;  %p515_p7 = scmp.lt.s32.totalorder %s513_s25, %s508_s16 }
  0x1a   : > { %p512_p4 = pneg %p511_p3  ;;  %p516_p8 = por %p515_p7, %p514_p5 }
  0x1c   : > { %p517_p10 = pnand %p516_p8, %p512_p4 }
  0x1e   : > { %520 = shalt.err (!%p517_p10)
}
  0x1f   : > { %s521_s6 = scalar_lea.vmem %s703_s14, 640  ;;  %s602_s8 = smov [#allocation2]  }
  0x20   : > { %p522_p9 = scmp.ne.s32.totalorder %s703_s14, %s521_s6  ;;  %s526_s9 = sshll.u32 %s602_s8, 4  ;;  %s527_s9 = int_to_ptr.vmem [resolvable:$false] %s526_s9 }
  0x21   : > { %s528_s10 = scalar_lea.vmem %s527_s9, 1280  ;;  %p529_p3 = scmp.lt.s32.totalorder %s703_s14, %s527_s9 }
  0x22   : > { %p524_p0 = pnand %p522_p9, %p510_p2  ;;  %p530_p12 = scmp.lt.s32.totalorder %s528_s10, %s521_s6 }
  0x24   : > { %p525_p1 = pneg %p524_p0  ;;  %p531_p11 = por %p530_p12, %p529_p3 }
  0x26   : > { %p532_p6 = pnand %p531_p11, %p525_p1 }
  0x28   : > { %535 = shalt.err (!%p532_p6)
}
  0x29   : > { %s603_s13 = smov 256   ;;  %s604_s16 = smov 128  }
  0x2a   : > { %s605_s17 = smov 8   ;;  %p206_p9 = scmp.lt.s32.totalorder %s600_s21, 3 }
  0x2b   : > { %456 = dma.hbm_to_vmem [thread:$0]  (!%p699_p13), %s697_s11, 640, %s703_s14, %s706_s15, %s603_s13, %s604_s16, %s605_s17  }
  0x2c   : > { %p799_p0 = scmp.ge.s32.totalorder %s600_s21, 1 }
  0x2e   : > { %p207_p2 = pnand %p799_p0, %p206_p9 }
  0x2f   : > { %s731_s23 = sand.u32 (!%p207_p2), 1, %s592_s19   ;;  %p800_p6 = scmp.ne.s32.totalorder (!%p207_p2), %s795_s28, 0 }
  0x30   : > { %210 = sbr.rel (%p207_p2) target bundleno = 439 (0x1b7), region = 40  ;;  %s213_s26 = scalar_lea.sflag (!%p207_p2), [#allocation3], %s731_s23 }
  0x31   : > { %s448_s25 = smul.u32 (!%p207_p2), 40, %s731_s23 }
  0x33   : > { %s216_s7 = scalar_lea.vmem (!%p207_p2), [#allocation2], %s448_s25 }
  0x35   : > { %579 = dma.done.wait (%p800_p6), %s213_s26, 640  }
  0x36   : > { %581 = vsyncadd (%p800_p6), %s213_s26, 4294966656  ;;  %v606_v0 = vmov 0   ;;  %v249_v1 = vld [vmem:[%s216_s7 + $0x20] sm:$0x33]  ;;  %vm285_vm0 = vcmask 1041408   ;;  %vm281_vm1 = vcmask 293888  }
  0x37   : > { %324 = vmatprep.mubr.bf16.mxu0 %v606_v0  ;;  %499 = vset.pattern.permute.xlu0 %v606_v0  ;;  %v440_v2 = vcombine.high %v249_v1, %v249_v1  ;;  %v439_v3 = vcombine.low %v249_v1, %v249_v1  ;;  %v502_v4 = vld [vmem:[%s216_s7 + $0x14] ss:$8 sps:$4 sm:$0xff]   ;;  %v504_v7 = vld [vmem:[%s216_s7 + $0x10] ss:$8 sps:$4 sm:$0xff]   ;;  %v505_v8 = vld [vmem:[%s216_s7 + $0x4] ss:$8 sps:$4 sm:$0xff]  }
  0x38   : > { %v250_v6 = vld [vmem:[%s789_s2] sm:$0xff]  ;;  %s443_s10 = sshll.u32 %s659_s22, 4  ;;  %s241_s13 = scalar_lea.vmem [#allocation5], %s731_s23 }
  0x39   : > { %441 = vmatprep.subr.msk.bf16.mxu0 %vm285_vm0, %v440_v2  ;;  %v287_v5 = vsel %vm285_vm0, %v439_v3, 0  ;;  %253 = vperm.xlu0 %499, %v250_v6   ;;  %v507_v9 = vld [vmem:[%s216_s7] ss:$8 sps:$4 sm:$0xff]   ;;  %s363_s16 = sshll.u32 %s241_s13, 4  ;;  %s361_s26 = scalar_lea.hbm %s792_s5, %s443_s10  ;;  %s364_s16 = int_to_ptr.vmem [resolvable:$true] %s363_s16 }
  0x3a   : > { %303 = vmatpush1.bf16.msra.mxu0 %v287_v5  ;;  %v244_v10 = vld [vmem:[%s788_s1] sm:$0xf]  ;;  %s351_s7 = scalar_lea.sflag [#allocation4], %s731_s23  ;;  %s536_s11 = scalar_lea.vmem %s364_s16, 16 }
  0x3b   : > { %304 = vmatprep.subr.bf16.mxu0 %v502_v4  ;;  %v335_v21 = vld [vmem:[%s790_s3] sm:$0xff]  ;;  %p537_p11 = scmp.ne.s32.totalorder %s364_s16, %s536_s11  ;;  %p801_p12 = scmp.ne.s32.totalorder %s796_s29, 0 }
  0x3c   : > { %v336_v30 = vld [vmem:[%s791_s4] sm:$0x1]  ;;  %s607_s12 = smov [#allocation5]  }
  0x3d   : > { %p538_p13 = pnand %p537_p11, %p801_p12  ;;  %s540_s28 = sshll.u32 %s607_s12, 4  ;;  %s541_s28 = int_to_ptr.vmem [resolvable:$false] %s540_s28 }
  0x3e   : > { %305 = vmatpush1.bf16.msra.mxu0 %v504_v7  ;;  %s542_s22 = scalar_lea.vmem %s541_s28, 32  ;;  %p543_p5 = scmp.lt.s32.totalorder %s364_s16, %s541_s28 }
  0x3f   : > { %306 = vmatprep.subr.bf16.mxu0 %v505_v8  ;;  %p539_p4 = pneg %p538_p13  ;;  %p544_p7 = scmp.lt.s32.totalorder %s542_s22, %s536_s11 }
  0x41   : > { %p545_p8 = por %p544_p7, %p543_p5 }
  0x42   : > { %307 = vmatpush1.bf16.msra.mxu0 %v507_v9 }
  0x43   : > { %p546_p10 = pnand %p545_p8, %p539_p4 }
  0x45   : > { %442 = vmatmul.mubr.msk.bf16.vlgmr.msra.gmra.mxu0 %vm281_vm1, %v244_v10 }
  0xb4   : > { %v254_v11 = vpop.permute.xlu0 %253 }
 0x105   : > { %v326_v12 = vpop.f32.mrf.mxu0 }
 0x106   : > { %v327_v13 = vadd.f32 %v326_v12, %v254_v11 }
 0x107   : > { %v328_v14 = vpop.f32.mrf.mxu0 }
 0x108   : > { %v329_v15 = vadd.f32 %v328_v14, %v254_v11  ;;  %v333_v17 = vmax.f32 %v327_v13, 0.0 }
 0x109   : > { %v330_v16 = vpop.f32.mrf.mxu0 }
 0x10a   : > { %v334_v18 = vmax.f32 %v329_v15, 0.0 }
 0x10b   : > { %v331_v19 = vpop.f32.mrf.mxu0 }
 0x10c   : > { %v337_v20 = vadd.f32 %v334_v18, %v333_v17 }
 0x10e   : > { %338 = vadd.xlane.f32.xlu0 %v337_v20 }
 0x197   : > { %v339_v22 = vpop.xlane.xlu0 %338 }
 0x198   : > { %v340_v23 = vmul.f32 0.00390625, %v339_v22 }
 0x19a   : > { %v341_v24 = vmul.f32 %v340_v23, %v335_v21 }
 0x19c   : > { %v342_v25 = vrot.slane %v341_v24, 4 }
 0x19e   : > { %v343_v26 = vadd.f32 %v342_v25, %v341_v24 }
 0x1a0   : > { %v344_v27 = vrot.slane %v343_v26, 2 }
 0x1a2   : > { %v345_v28 = vadd.f32 %v344_v27, %v343_v26 }
 0x1a4   : > { %v346_v29 = vrot.slane %v345_v28, 1 }
 0x1a6   : > { %v347_v31 = vadd.f32 %v346_v29, %v345_v28 }
 0x1a8   : > { %v348_v32 = vadd.f32 %v347_v31, %v336_v30 }
 0x1aa   : > { %349 = vst [vmem:[%s241_s13] sm:$0x1] %v348_v32 }
 0x1ab   : > { %549 = shalt.err (!%p546_p10)
}
 0x1ac   : > { %s550_s14 = scalar_lea.hbm %s361_s26, 16  ;;  %s554_s6 = scalar_lea.hbm %s792_s5, 32 }
 0x1ad   : > { %p551_p1 = scmp.ne.s32.totalorder %s361_s26, %s550_s14  ;;  %p555_p0 = scmp.lt.s32.totalorder %s361_s26, %s792_s5 }
 0x1ae   : > { %p556_p2 = scmp.lt.s32.totalorder %s554_s6, %s550_s14 }
 0x1af   : > { %p552_p3 = pnand %p551_p1, %p801_p12 }
 0x1b0   : > { %p557_p6 = por %p556_p2, %p555_p0 }
 0x1b1   : > { %p553_p9 = pneg %p552_p3 }
 0x1b3   : > { %p558_p11 = pnand %p557_p6, %p553_p9 }
 0x1b5   : > { %561 = shalt.err (!%p558_p11)
}
 0x1b6   : > { %451 = dma.vmem_to_hbm [thread:$0]  (%p801_p12), %s364_s16, 16, %s361_s26, %s351_s7  }
 0x1b7 PF: > { %s375_s10 = sand.u32 1, %s588_s18   ;;  %p802_p13 = scmp.ne.s32.totalorder %s797_s30, 0 }
 0x1b8   : > { %p803_p4 = scmp.ge.s32.totalorder %s600_s21, 2  ;;  %s376_s13 = scalar_lea.sflag [#allocation4], %s375_s10 }
 0x1ba   : > { %p458_p5 = pnand %p803_p4, %p802_p13 }
 0x1bc   : > { %p459_p7 = pneg %p458_p5 }
 0x1be   : > { %583 = dma.done.wait (%p459_p7), %s376_s13, 16  }
 0x1bf   : > { %585 = vsyncadd (%p459_p7), %s376_s13, 4294967280  ;;  %p18_p8 = scmp.ge.s32.totalorder %s663_s24, 4   ;;  %s804_s18 = smov %s592_s19 }
 0x1c0   : > { %s805_s19 = smov %s596_s20  ;;  %s806_s20 = smov %s675_s27 }
 0x1c1   : > { %s807_s21 = smov %s663_s24  ;;  %20 = sbr.rel (!%p18_p8) target bundleno = 5 (0x5), region = 85 }
 0x1c6   :  { %380 = vsyncpa [#allocation3], 1 }
 0x1c7   :  { %382 = vsyncpa [#allocation3 + $0x1], 1 }
 0x1c8   :  { %383 = vsyncpa [#allocation4], 1 }
 0x1c9   :  { %385 = vsyncpa [#allocation4 + $0x1], 1 }

</bundles_post_ra>
